<compile_context>
chip_gen: v7x
topology: tpu7x:2x2x1
jax: 0.10.0
libtpu: 0.0.40
codegen_flags: <defaults>
</compile_context>

<pallas_src>
from functools import partial

import jax
import jax.numpy as jnp
from jax.experimental import pallas as pl
from jax.experimental.pallas import tpu as pltpu


def _round_up(a, b):
    return ((a + b - 1) // b) * b


def _pick_block_m(s):
    """Batch tile: multiple of 8, capped at 1024 rows so the double-buffered
    input/output blocks stay tiny on v5e/v6e/v7x."""
    return min(1024, max(8, _round_up(s, 8)))


def _make_flrsh_kernel(n_active, sigmoid):
    """Kernel over one batch tile: logits = sum_i x_i @ W_i + b, then
    row-wise softmax (or sigmoid) along the class axis."""

    def kernel(*refs):
        x_refs = refs[:n_active]
        w_refs = refs[n_active:2 * n_active]
        b_ref = refs[2 * n_active]
        o_ref = refs[2 * n_active + 1]

        # Accumulate the per-client partial matmuls on the MXU in f32.
        acc = jnp.dot(x_refs[0][...], w_refs[0][...],
                      preferred_element_type=jnp.float32)
        for i in range(1, n_active):
            acc = acc + jnp.dot(x_refs[i][...], w_refs[i][...],
                                preferred_element_type=jnp.float32)
        logits = acc + b_ref[...]

        if sigmoid:
            # sigmoid(x) = 1 / (1 + exp(-x)); reciprocal runs on the EUP slot.
            o_ref[...] = pl.reciprocal(1.0 + jnp.exp(-logits), approx=True)
        else:
            m = jnp.max(logits, axis=-1, keepdims=True)
            e = jnp.exp(logits - m)
            denom = jnp.sum(e, axis=-1, keepdims=True)
            o_ref[...] = e * pl.reciprocal(denom, approx=True)

    return kernel


@partial(jax.jit,
         static_argnames=("inactive", "batch", "classes", "block_m",
                          "sigmoid", "cast_dtype"))
def _flrsh_forward(xs, loc_w, loc_b, sh_w, sh_b, v, *,
                   inactive, batch, classes, block_m, sigmoid, cast_dtype):
    """xs/loc_w/loc_b contain ONLY the active clients (S[i] != 0)."""
    n_active = len(xs)

    # ---- fold all biases + inactive v[i] into one (1, classes) bias ----
    bias = jnp.zeros((classes,), jnp.float32)
    for i in inactive:
        bias = bias + v[i].astype(jnp.float32)
    for bi in loc_b:
        bias = bias + bi.astype(jnp.float32) + sh_b.astype(jnp.float32)
    bias = bias.reshape(1, classes)

    if n_active == 0:
        # No linear work at all: softmax/sigmoid of a broadcast bias.
        logits = jnp.broadcast_to(bias, (batch, classes))
        out = (jax.nn.sigmoid(logits) if sigmoid
               else jax.nn.softmax(logits, axis=-1))
    else:
        # Activations: stream in native dtype unless an explicit compute dtype
        # was requested (avoids an un-fusable extra HBM pass by default).
        xs2 = []
        for xi in xs:
            xi = jnp.reshape(xi, (xi.shape[0], -1))
            if cast_dtype is not None and xi.dtype != cast_dtype:
                xi = xi.astype(cast_dtype)
            xs2.append(xi)
        cdt = xs2[0].dtype
        # Per-client fused weight: [loc_w[i].T ; sh_w.T]  (cl[i]+shl, classes).
        ws = [jnp.concatenate([jnp.transpose(wi), jnp.transpose(sh_w)],
                              axis=0).astype(cdt) for wi in loc_w]

        grid_m = pl.cdiv(batch, block_m)
        x_specs = [pl.BlockSpec((block_m, xi.shape[1]), lambda m: (m, 0))
                   for xi in xs2]
        w_specs = [pl.BlockSpec(wi.shape, lambda m: (0, 0)) for wi in ws]
        b_spec = pl.BlockSpec((1, classes), lambda m: (0, 0))
        out_spec = pl.BlockSpec((block_m, classes), lambda m: (m, 0))

        out = pl.pallas_call(
            _make_flrsh_kernel(n_active, sigmoid),
            out_shape=jax.ShapeDtypeStruct((batch, classes), jnp.float32),
            grid=(grid_m,),
            in_specs=x_specs + w_specs + [b_spec],
            out_specs=out_spec,
            compiler_params=pltpu.CompilerParams(
                dimension_semantics=("parallel",),      # megacore split on v7x
                vmem_limit_bytes=32 * 1024 * 1024),
        )(*xs2, *ws, bias)

    if sigmoid:
        out = jnp.squeeze(out, axis=1)
    return out


class FLRSHPallas:
    """JAX/Pallas re-implementation of the PyTorch FLRSH module."""

    def __init__(self, feats, nc=4, classes=5, seed=0,
                 compute_dtype=None, block_m=None):
        self.nc = nc
        self.classes = classes
        self.compute_dtype = compute_dtype  # None -> stream x in native dtype
        self.block_m = block_m              # None -> auto (multiple of 8, <=1024)
        self.shared = [f for f in feats[0] if f in feats[1]]
        self.shl = len(self.shared)
        self.c = [[f for f in feats[i] if f not in self.shared]
                  for i in range(nc)]
        self.cl = [len(ci) for ci in self.c]

        # Deterministic parameter init (torch nn.Linear-style uniform bounds).
        def linear_init(k, in_f, out_f):
            kw, kb = jax.random.split(k)
            bound = 1.0 / (in_f ** 0.5)
            w = jax.random.uniform(kw, (out_f, in_f), jnp.float32, -bound, bound)
            b = jax.random.uniform(kb, (out_f,), jnp.float32, -bound, bound)
            return w, b

        keys = jax.random.split(jax.random.PRNGKey(seed), nc + 1)
        self.sh_w, self.sh_b = linear_init(keys[0], self.shl, classes)
        self.loc_w, self.loc_b = [], []
        for i in range(nc):
            w, b = linear_init(keys[i + 1], self.cl[i], classes)
            self.loc_w.append(w)
            self.loc_b.append(b)

        # Module state with the same defaults as the torch __init__.
        self.v = jnp.zeros((nc, classes), jnp.float32)
        self.S = jnp.zeros((nc,), jnp.float32)

    def forward(self, x):
        if len(x) != self.nc:
            raise Exception('Invalid number of inputs.')
        s = int(x[0].shape[0])
        block_m = self.block_m if self.block_m is not None else _pick_block_m(s)

        # S is concrete module state (mirrors torch's `if self.S[i]`), so the
        # active set is resolved here and inactive clients never hit the kernel.
        S_host = jax.device_get(self.S)
        active = tuple(i for i in range(self.nc) if float(S_host[i]) != 0.0)
        inactive = tuple(i for i in range(self.nc) if float(S_host[i]) == 0.0)

        xs = tuple(x[i] for i in active)
        loc_w = tuple(self.loc_w[i] for i in active)
        loc_b = tuple(self.loc_b[i] for i in active)

        return _flrsh_forward(xs, loc_w, loc_b, self.sh_w, self.sh_b, self.v,
                              inactive=inactive, batch=s,
                              classes=self.classes, block_m=block_m,
                              sigmoid=(self.classes == 1),
                              cast_dtype=self.compute_dtype)


def reference_forward(model, x):
    """Pure-JAX float32 mirror of the PyTorch forward for correctness checks."""
    fl = []
    for i in range(model.nc):
        x2 = jnp.reshape(x[i], (x[i].shape[0], -1)).astype(jnp.float32)
        f = model.cl[i]
        if float(model.S[i]) != 0:
            li = (x2[:, :f] @ model.loc_w[i].T + model.loc_b[i]
                  + x2[:, f:] @ model.sh_w.T + model.sh_b)
        else:
            li = jnp.tile(model.v[i][None, :], (x2.shape[0], 1))
        fl.append(li)
    tot = sum(fl)
    if model.classes == 1:
        return jnp.squeeze(jax.nn.sigmoid(tot), axis=1)
    return jax.nn.softmax(tot, axis=1)


if __name__ == "__main__":
    # Feature lists: shared features = intersection of feats[0] and feats[1].
    feats = [
        ['a0', 'a1', 's1', 's2', 's3'],              # cl[0] = 2
        ['b0', 'b1', 'b2', 's1', 's2', 's3'],        # cl[1] = 3
        ['c0', 'c1', 'c2', 'c3', 's1', 's2', 's3'],  # cl[2] = 4
        ['d0', 's1', 's2', 's3'],                    # cl[3] = 1
    ]
    nc, classes, batch = 4, 5, 200

    key = jax.random.PRNGKey(0)
    kv, kb, kx = jax.random.split(key, 3)

    # f32-compute model with a small batch tile (64) so the test exercises a
    # multi-step grid WITH a partial tail block (200 = 3*64 + 8 rows).
    model = FLRSHPallas(feats, nc=nc, classes=classes, seed=0, block_m=64)
    # Activate a mix of clients so both branches (linear path and v-broadcast
    # path) of the forward are exercised; client 2 falls back to v[2].
    model.S = jnp.array([1.0, 1.0, 0.0, 1.0], jnp.float32)
    model.v = 0.1 * jax.random.normal(kv, (nc, classes), jnp.float32)

    ks = jax.random.split(kx, nc)
    x = [jax.random.normal(ks[i], (batch, model.cl[i] + model.shl), jnp.float32)
         for i in range(nc)]

    out = jax.block_until_ready(model.forward(x))
    ref = reference_forward(model, x)
    assert out.shape == (batch, classes)
    # Tolerance budget: approx EUP reciprocal in the softmax epilogue.
    assert jnp.allclose(out, ref, atol=5e-3, rtol=5e-3), \
        "f32 softmax mismatch vs reference"

    # bfloat16-compute model (explicit cast path), auto tiling.
    model_bf16 = FLRSHPallas(feats, nc=nc, classes=classes, seed=0,
                             compute_dtype=jnp.bfloat16)
    model_bf16.S = model.S
    model_bf16.v = model.v
    out_bf16 = jax.block_until_ready(model_bf16.forward(x))
    assert out_bf16.shape == (batch, classes)
    # Looser tolerance: bf16 activations/weights (f32 MXU accumulation).
    assert jnp.allclose(out_bf16, ref, atol=3e-2, rtol=3e-2), \
        "bf16 softmax mismatch vs reference"

    # Binary head (classes=1) exercises the sigmoid + squeeze path.
    model_bin = FLRSHPallas(feats, nc=nc, classes=1, seed=1, block_m=64)
    model_bin.S = jnp.array([0.0, 1.0, 1.0, 1.0], jnp.float32)
    model_bin.v = 0.1 * jax.random.normal(kb, (nc, 1), jnp.float32)
    out_bin = jax.block_until_ready(model_bin.forward(x))
    ref_bin = reference_forward(model_bin, x)
    assert out_bin.shape == (batch,)
    assert jnp.allclose(out_bin, ref_bin, atol=5e-3, rtol=5e-3), \
        "sigmoid mismatch vs reference"

    # Default module state (S == 0 everywhere): every client falls back to
    # v[i]; this path bypasses Pallas (pure broadcast + softmax) by design.
    model_off = FLRSHPallas(feats, nc=nc, classes=classes, seed=0)
    out_off = jax.block_until_ready(model_off.forward(x))
    ref_off = reference_forward(model_off, x)
    assert out_off.shape == (batch, classes)
    assert jnp.allclose(out_off, ref_off, atol=1e-5, rtol=1e-5), \
        "all-inactive path mismatch vs reference"

    print("KERNEL_OK")
</pallas_src>

<mosaic_0001>
module attributes {stable_mosaic.version = 11 : i64} {
  func.func @kernel(%arg0: i32, %arg1: memref<64x5xf32, #tpu.memory_space<vmem>>, %arg2: memref<64x6xf32, #tpu.memory_space<vmem>>, %arg3: memref<64x4xf32, #tpu.memory_space<vmem>>, %arg4: memref<5x5xf32, #tpu.memory_space<vmem>>, %arg5: memref<6x5xf32, #tpu.memory_space<vmem>>, %arg6: memref<4x5xf32, #tpu.memory_space<vmem>>, %arg7: memref<1x5xf32, #tpu.memory_space<vmem>>, %arg8: memref<64x5xf32, #tpu.memory_space<vmem>>) attributes {dimension_semantics = [#tpu.dimension_semantics<parallel>], iteration_bounds = array<i64: 4>, scalar_prefetch = 0 : i64, scratch_operands = 0 : i64, tpu.core_type = #tpu.core_type<tc>, window_params = [{transform_indices = @transform_0, window_bounds = array<i64: 64, 5>}, {transform_indices = @transform_1, window_bounds = array<i64: 64, 6>}, {transform_indices = @transform_2, window_bounds = array<i64: 64, 4>}, {pipeline_mode = #tpu.pipeline_mode<synchronous>, transform_indices = @transform_3, window_bounds = array<i64: 5, 5>}, {pipeline_mode = #tpu.pipeline_mode<synchronous>, transform_indices = @transform_4, window_bounds = array<i64: 6, 5>}, {pipeline_mode = #tpu.pipeline_mode<synchronous>, transform_indices = @transform_5, window_bounds = array<i64: 4, 5>}, {pipeline_mode = #tpu.pipeline_mode<synchronous>, transform_indices = @transform_6, window_bounds = array<i64: 1, 5>}, {transform_indices = @transform_7, window_bounds = array<i64: 64, 5>}]} {
    %c0 = arith.constant 0 : index
    %c0_0 = arith.constant 0 : index
    %0 = vector.load %arg1[%c0, %c0_0] : memref<64x5xf32, #tpu.memory_space<vmem>>, vector<64x5xf32>
    %c0_1 = arith.constant 0 : index
    %c0_2 = arith.constant 0 : index
    %1 = vector.load %arg4[%c0_1, %c0_2] : memref<5x5xf32, #tpu.memory_space<vmem>>, vector<5x5xf32>
    %cst = arith.constant dense<0.000000e+00> : vector<64x5xf32>
    %2 = tpu.matmul %0, %1, %cst {dimension_numbers = #tpu.dot_dimension_numbers<[1], [0], [0], [1], [0, 0, 1, 1], [], []>} : vector<64x5xf32>, vector<5x5xf32>, vector<64x5xf32> -> vector<64x5xf32>
    %c0_3 = arith.constant 0 : index
    %c0_4 = arith.constant 0 : index
    %3 = vector.load %arg2[%c0_3, %c0_4] : memref<64x6xf32, #tpu.memory_space<vmem>>, vector<64x6xf32>
    %c0_5 = arith.constant 0 : index
    %c0_6 = arith.constant 0 : index
    %4 = vector.load %arg5[%c0_5, %c0_6] : memref<6x5xf32, #tpu.memory_space<vmem>>, vector<6x5xf32>
    %cst_7 = arith.constant dense<0.000000e+00> : vector<64x5xf32>
    %5 = tpu.matmul %3, %4, %cst_7 {dimension_numbers = #tpu.dot_dimension_numbers<[1], [0], [0], [1], [0, 0, 1, 1], [], []>} : vector<64x6xf32>, vector<6x5xf32>, vector<64x5xf32> -> vector<64x5xf32>
    %6 = arith.addf %2, %5 : vector<64x5xf32>
    %c0_8 = arith.constant 0 : index
    %c0_9 = arith.constant 0 : index
    %7 = vector.load %arg3[%c0_8, %c0_9] : memref<64x4xf32, #tpu.memory_space<vmem>>, vector<64x4xf32>
    %c0_10 = arith.constant 0 : index
    %c0_11 = arith.constant 0 : index
    %8 = vector.load %arg6[%c0_10, %c0_11] : memref<4x5xf32, #tpu.memory_space<vmem>>, vector<4x5xf32>
    %cst_12 = arith.constant dense<0.000000e+00> : vector<64x5xf32>
    %9 = tpu.matmul %7, %8, %cst_12 {dimension_numbers = #tpu.dot_dimension_numbers<[1], [0], [0], [1], [0, 0, 1, 1], [], []>} : vector<64x4xf32>, vector<4x5xf32>, vector<64x5xf32> -> vector<64x5xf32>
    %10 = arith.addf %6, %9 : vector<64x5xf32>
    %c0_13 = arith.constant 0 : index
    %c0_14 = arith.constant 0 : index
    %11 = vector.load %arg7[%c0_13, %c0_14] : memref<1x5xf32, #tpu.memory_space<vmem>>, vector<1x5xf32>
    %12 = vector.broadcast %11 : vector<1x5xf32> to vector<64x5xf32>
    %13 = arith.addf %10, %12 : vector<64x5xf32>
    %cst_15 = arith.constant dense<0xFF800000> : vector<64xf32>
    %14 = vector.multi_reduction <maximumf>, %13, %cst_15 [1] : vector<64x5xf32> to vector<64xf32>
    %15 = vector.shape_cast %14 : vector<64xf32> to vector<64x1xf32>
    %16 = vector.broadcast %15 : vector<64x1xf32> to vector<64x5xf32>
    %17 = arith.subf %13, %16 : vector<64x5xf32>
    %18 = math.exp %17 : vector<64x5xf32>
    %cst_16 = arith.constant dense<0.000000e+00> : vector<64xf32>
    %19 = vector.multi_reduction <add>, %18, %cst_16 [1] : vector<64x5xf32> to vector<64xf32>
    %20 = vector.shape_cast %19 : vector<64xf32> to vector<64x1xf32>
    %21 = tpu.reciprocal %20 {approx = true} : vector<64x1xf32> -> vector<64x1xf32>
    %22 = vector.broadcast %21 : vector<64x1xf32> to vector<64x5xf32>
    %23 = arith.mulf %18, %22 : vector<64x5xf32>
    %c0_17 = arith.constant 0 : index
    %c0_18 = arith.constant 0 : index
    %24 = vector.load %arg8[%c0_17, %c0_18] : memref<64x5xf32, #tpu.memory_space<vmem>>, vector<64x5xf32>
    tpu.vector_store %arg8[%c0_17, %c0_18], %23 {strides = array<i32>} : memref<64x5xf32, #tpu.memory_space<vmem>>, vector<64x5xf32>,
    return
  }
  func.func @transform_0(%arg0: i32) -> (i32, i32) {
    %c0_i32 = arith.constant 0 : i32
    %c0_i32_0 = arith.constant 0 : i32
    return %arg0, %c0_i32 : i32, i32
  }
  func.func @transform_1(%arg0: i32) -> (i32, i32) {
    %c0_i32 = arith.constant 0 : i32
    %c0_i32_0 = arith.constant 0 : i32
    return %arg0, %c0_i32 : i32, i32
  }
  func.func @transform_2(%arg0: i32) -> (i32, i32) {
    %c0_i32 = arith.constant 0 : i32
    %c0_i32_0 = arith.constant 0 : i32
    return %arg0, %c0_i32 : i32, i32
  }
  func.func @transform_3(%arg0: i32) -> (i32, i32) {
    %c0_i32 = arith.constant 0 : i32
    %c0_i32_0 = arith.constant 0 : i32
    %c0_i32_1 = arith.constant 0 : i32
    return %c0_i32, %c0_i32_0 : i32, i32
  }
  func.func @transform_4(%arg0: i32) -> (i32, i32) {
    %c0_i32 = arith.constant 0 : i32
    %c0_i32_0 = arith.constant 0 : i32
    %c0_i32_1 = arith.constant 0 : i32
    return %c0_i32, %c0_i32_0 : i32, i32
  }
  func.func @transform_5(%arg0: i32) -> (i32, i32) {
    %c0_i32 = arith.constant 0 : i32
    %c0_i32_0 = arith.constant 0 : i32
    %c0_i32_1 = arith.constant 0 : i32
    return %c0_i32, %c0_i32_0 : i32, i32
  }
  func.func @transform_6(%arg0: i32) -> (i32, i32) {
    %c0_i32 = arith.constant 0 : i32
    %c0_i32_0 = arith.constant 0 : i32
    %c0_i32_1 = arith.constant 0 : i32
    return %c0_i32, %c0_i32_0 : i32, i32
  }
  func.func @transform_7(%arg0: i32) -> (i32, i32) {
    %c0_i32 = arith.constant 0 : i32
    %c0_i32_0 = arith.constant 0 : i32
    return %arg0, %c0_i32 : i32, i32
  }
}

</mosaic_0001>

<bundles_post_ra>
// kernel: _flrsh_forward.1
= control target key start
LH: loop header
LB: loop body
LE: loop exit
PB: predicated region body
PF: predicated region fallthrough
CT: control target
= control target key end

     0   :  { %s1593_s24 = smov 0   ;;  %s1595_s25 = smov 0   ;;  %s1804_s0 = inlined_call_operand.vmem [shape: f32[200,5], index: 0, kind: input, shape index: {}]   ;;  %s1805_s1 = inlined_call_operand.vmem [shape: f32[200,6], index: 1, kind: input, shape index: {}]   ;;  %s1806_s2 = inlined_call_operand.vmem [shape: f32[200,4], index: 2, kind: input, shape index: {}]   ;;  %s1807_s3 = inlined_call_operand.vmem [shape: f32[5,5], index: 3, kind: input, shape index: {}]   ;;  %s1808_s4 = inlined_call_operand.vmem [shape: f32[6,5], index: 4, kind: input, shape index: {}]   ;;  %s1809_s5 = inlined_call_operand.vmem [shape: f32[4,5], index: 5, kind: input, shape index: {}]   ;;  %s1810_s6 = inlined_call_operand.vmem [shape: f32[1,5], index: 6, kind: input, shape index: {}]   ;;  %s1811_s7 = inlined_call_operand.vmem [shape: f32[200,5], index: 7, kind: output, shape index: {}]  }
   0x1   :  { %s1597_s26 = smov 0  }
   0x2 LB: > { %s1606_s27 = sadd.s32 4294967295, %s1519_s26   ;;  %s1608_s28 = sadd.s32 1, %s1519_s26   ;;  %s1519_s26 = sphi %s1597_s26, %s1818_s26   ;;  %s1515_s25 = sphi %s1595_s25, %s1817_s25   ;;  %s1511_s24 = sphi %s1593_s24, %s1816_s24  }
   0x3   : > { %s183_s29 = ssub.s32 %s1519_s26, %s1608_s28  ;;  %s186_s30 = sadd.s32 1, %s1515_s25 }
   0x4   : > { %p184_p0 = scmp.eq.s32.totalorder %s183_s29, 0  ;;  %p196_p1 = scmp.ne.s32.totalorder %s1515_s25, %s1511_s24 }
   0x5   : > { %p197_p2 = scmp.eq.s32.totalorder %s1606_s27, 3  ;;  %p1202_p3 = scmp.ge.s32.totalorder %s1519_s26, 1 }
   0x6   : > { %s1616_s8 = scalar_select %p184_p0, %s1515_s25, %s186_s30  }
   0x7   : > { %p1618_p4 = por %p197_p2, %p196_p1  ;;  %p284_p5 = scmp.lt.s32.totalorder %s1519_s26, 5 }
   0x9   : > { %p285_p6 = pnand %p1202_p3, %p284_p5 }
   0xa   : > { %v392_v0 = vld [vmem:[%s1807_s3] sm:$0x1f] (!%p285_p6)  ;;  %vm561_vm0 = vcmask (!%p285_p6), 1044480   ;;  %vm427_vm1 = vcmask (!%p285_p6), 1045504   ;;  %s1630_s14 = sshll.u32 (!%p285_p6), %s1606_s27, 3  ;;  %vm704_vm2 = vcmask (!%p285_p6), 1043456  }
   0xb   : > { %288 = sbr.rel (%p285_p6) target bundleno = 630 (0x276), region = 48  ;;  %v401_v1 = vld [vmem:[%s1808_s4] sm:$0x3f] (!%p285_p6)  ;;  %1299 = vmatprep.subr.msk.mxu0 (!%p285_p6), %vm561_vm0, %v392_v0  ;;  %p342_p7 = scmp.lt.s32.totalorder (!%p285_p6), %s1630_s14, 24  ;;  %vm402_vm3 = vcmask (!%p285_p6), 48128   ;;  %vm536_vm4 = vcmask (!%p285_p6), 39936  }
   0xc   : > { %1285 = vmatprep.subr.msk.mxu1 (!%p285_p6), %vm427_vm1, %v401_v1  ;;  %v678_v2 = vld [vmem:[%s1809_s5] sm:$0xf] (!%p285_p6)  ;;  %1300 = vmatpush3.msk.msra.mxu0 (!%p285_p6), %vm561_vm0, %v392_v0  ;;  %vm679_vm5 = vcmask (!%p285_p6), 31744   ;;  %s334_s13 = sand.u32 (!%p285_p6), 1, %s1511_s24  }
   0xd   : > { %1286 = vmatpush3.msk.msra.mxu1 (!%p285_p6), %vm427_vm1, %v401_v1  ;;  %1313 = vmatprep.subr.msk.mxu0 (!%p285_p6), %vm704_vm2, %v678_v2  ;;  %v1237_v32 = vld [vmem:[%s1810_s6] ss:$0 sm:$0xff] (!%p285_p6)  ;;  %s1203_s15 = sshll.u32 (!%p285_p6), %s334_s13, 6 }
   0xe   : > { %1327 = vmatprep.subr.msk.mxu1 (!%p285_p6), %vm561_vm0, %v392_v0  ;;  %s1725_s16 = scalar_lea.vmem (!%p285_p6), [#allocation2], %s1203_s15  }
  0x12   : > { %s343_s17 = scalar_select %p342_p7, %s1630_s14, 24 }
  0x13   : > { %s940_s24 = ssub.s32 (%p1618_p4), 25, %s1630_s14 }
  0x14   : > { %s1205_s18 = sshll.u32 %s343_s17, 3  ;;  %s1255_s17 = sshll.u32 (%p1618_p4), %s1606_s27, 6 }
  0x15   : > { %s1643_s21 = scalar_lea.vmem %s1805_s1, %s1205_s18  ;;  %s1648_s26 = scalar_lea.vmem %s1804_s0, %s1205_s18 }
  0x16   : > { %v393_v3 = vld [vmem:[%s1643_s21] sm:$0xff]  ;;  %v394_v5 = vld [vmem:[%s1643_s21 + $0x8] sm:$0xff]  ;;  %v395_v7 = vld [vmem:[%s1643_s21 + $0x10] sm:$0xff]  ;;  %s1661_s10 = scalar_lea.vmem %s1806_s2, %s1205_s18  ;;  %p941_p8 = scmp.lt.s32.totalorder (%p1618_p4), %s940_s24, 8 }
  0x17   : > { %v384_v4 = vld [vmem:[%s1648_s26] sm:$0xff]  ;;  %1287 = vmatprep.mubr.msk.f32.mxu1 %vm402_vm3, %v393_v3  ;;  %v385_v6 = vld [vmem:[%s1648_s26 + $0x8] sm:$0xff]  ;;  %v386_v8 = vld [vmem:[%s1648_s26 + $0x10] sm:$0xff]  ;;  %s1750_s20 = scalar_lea.vmem (%p1618_p4), %s1811_s7, %s1255_s17  }
  0x18   : > { %1301 = vmatprep.mubr.msk.f32.mxu0 %vm536_vm4, %v384_v4  ;;  %1288 = vmatmul.mubr.msk.f32.vlgmr.msra.gmra.mrb[0].mxu1 %vm402_vm3, %v394_v5  ;;  %v396_v9 = vld [vmem:[%s1643_s21 + $0x18] sm:$0xff]  ;;  %v397_v11 = vld [vmem:[%s1643_s21 + $0x20] sm:$0xff]  ;;  %v398_v13 = vld [vmem:[%s1643_s21 + $0x28] sm:$0xff] }
  0x19   : > { %1302 = vmatmul.mubr.msk.f32.vlgmr.msra.gmra.mrb[0].mxu0 %vm536_vm4, %v385_v6  ;;  %1290 = vmatprep.mubr.msk.f32.mxu1 %vm402_vm3, %v395_v7  ;;  %v387_v10 = vld [vmem:[%s1648_s26 + $0x18] sm:$0xff]  ;;  %v670_v12 = vld [vmem:[%s1661_s10] sm:$0xff]  ;;  %v671_v14 = vld [vmem:[%s1661_s10 + $0x8] sm:$0xff] }
  0x1a   : > { %1314 = vmatpush3.msk.msra.mxu0 %vm704_vm2, %v678_v2  ;;  %1328 = vmatpush3.msk.msra.mxu1 %vm561_vm0, %v392_v0  ;;  %v399_v15 = vld [vmem:[%s1643_s21 + $0x30] sm:$0xff]  ;;  %v400_v17 = vld [vmem:[%s1643_s21 + $0x38] sm:$0xff]  ;;  %v388_v19 = vld [vmem:[%s1648_s26 + $0x20] sm:$0xff] }
  0x1b   : > { %1304 = vmatprep.mubr.msk.f32.mxu0 %vm536_vm4, %v386_v8  ;;  %v672_v16 = vld [vmem:[%s1661_s10 + $0x10] sm:$0xff]  ;;  %v673_v18 = vld [vmem:[%s1661_s10 + $0x18] sm:$0xff]  ;;  %v674_v20 = vld [vmem:[%s1661_s10 + $0x20] sm:$0xff] }
  0x1c   : > { %1291 = vmatmul.mubr.msk.f32.gmra.mrb[2].mxu1 %vm402_vm3, %v396_v9  ;;  %v389_v21 = vld [vmem:[%s1648_s26 + $0x28] sm:$0xff]  ;;  %v390_v23 = vld [vmem:[%s1648_s26 + $0x30] sm:$0xff]  ;;  %v391_v25 = vld [vmem:[%s1648_s26 + $0x38] sm:$0xff] }
  0x1d   : > { %1305 = vmatmul.mubr.msk.f32.gmra.mrb[2].mxu0 %vm536_vm4, %v387_v10  ;;  %1293 = vmatprep.mubr.msk.f32.mxu1 %vm402_vm3, %v397_v11  ;;  %v675_v22 = vld [vmem:[%s1661_s10 + $0x28] sm:$0xff]  ;;  %v676_v24 = vld [vmem:[%s1661_s10 + $0x30] sm:$0xff]  ;;  %v677_v26 = vld [vmem:[%s1661_s10 + $0x38] sm:$0xff] }
  0x1e   : > { %1315 = vmatprep.mubr.msk.f32.mxu0 %vm679_vm5, %v670_v12 }
  0x20   : > { %1294 = vmatmul.mubr.msk.f32.gmra.mrb[4].mxu1 %vm402_vm3, %v398_v13 }
  0x21   : > { %1316 = vmatmul.mubr.msk.f32.vlgmr.msra.gmra.mrb[0].mxu0 %vm679_vm5, %v671_v14  ;;  %1296 = vmatprep.mubr.msk.f32.mxu1 %vm402_vm3, %v399_v15 }
  0x22   : > { %1318 = vmatprep.mubr.msk.f32.mxu0 %vm679_vm5, %v672_v16 }
  0x24   : > { %1297 = vmatmul.mubr.msk.f32.gmra.mrb[6].mxu1 %vm402_vm3, %v400_v17 }
  0x25   : > { %1319 = vmatmul.mubr.msk.f32.gmra.mrb[2].mxu0 %vm679_vm5, %v673_v18  ;;  %1307 = vmatprep.mubr.msk.f32.mxu1 %vm536_vm4, %v388_v19 }
  0x26   : > { %1321 = vmatprep.mubr.msk.f32.mxu0 %vm679_vm5, %v674_v20 }
  0x28   : > { %1308 = vmatmul.mubr.msk.f32.vlgmr.msra.gmra.mrb[4].mxu1 %vm536_vm4, %v389_v21 }
  0x29   : > { %1322 = vmatmul.mubr.msk.f32.gmra.mrb[4].mxu0 %vm679_vm5, %v675_v22  ;;  %1310 = vmatprep.mubr.msk.f32.mxu1 %vm536_vm4, %v390_v23 }
  0x2a   : > { %1324 = vmatprep.mubr.msk.f32.mxu0 %vm679_vm5, %v676_v24 }
  0x2c   : > { %1311 = vmatmul.mubr.msk.f32.gmra.mrb[6].mxu1 %vm536_vm4, %v391_v25 }
  0x2d   : > { %1325 = vmatmul.mubr.msk.f32.gmra.mrb[6].mxu0 %vm679_vm5, %v677_v26 }
  0xeb   : > { %v1289_v27 = vpop.f32.mrb[0].mxu1 }
  0xec   : > { %v497_v28 = vpop.f32.mrb[1].mxu1 }
  0xef   : > { %v1292_v29 = vpop.f32.mrb[2].mxu1 }
  0xf0   : > { %v507_v30 = vpop.f32.mrb[3].mxu1 }
  0xf4   : > { %v1317_v31 = vpop.f32.mrb[0].mxu0 }
  0xf5   : > { %v1329_v33 = vadd.f32 %v1317_v31, %v1289_v27  ;;  %v774_v34 = vpop.f32.mrb[1].mxu0 }
  0xf6   : > { %v1330_v35 = vadd.f32 %v774_v34, %v497_v28 }
  0xf7   : > { %v829_v36 = vadd.f32 %v1329_v33, %v1237_v32 }
  0xf8   : > { %v1320_v37 = vpop.f32.mrb[2].mxu0  ;;  %v828_v41 = vadd.f32 %v1330_v35, %v1237_v32 }
  0xf9   : > { %v1331_v38 = vadd.f32 %v1320_v37, %v1292_v29  ;;  %v784_v39 = vpop.f32.mrb[3].mxu0  ;;  %v839_v40 = vsel %vm536_vm4, %v829_v36, -inf }
  0xfa   : > { %v1332_v42 = vadd.f32 %v784_v39, %v507_v30  ;;  %840 = vmax.xlane.f32.xlu0 %v839_v40  ;;  %v836_v49 = vsel %vm536_vm4, %v828_v41, -inf }
  0xfb   : > { %v831_v43 = vadd.f32 %v1331_v38, %v1237_v32  ;;  %v1309_v44 = vpop.f32.mrb[4].mxu1 }
  0xfc   : > { %v1323_v45 = vpop.f32.mrb[4].mxu0  ;;  %v651_v47 = vpop.f32.mrb[5].mxu1  ;;  %v830_v51 = vadd.f32 %v1332_v42, %v1237_v32 }
  0xfd   : > { %v1333_v46 = vadd.f32 %v1323_v45, %v1309_v44  ;;  %v794_v48 = vpop.f32.mrb[5].mxu0  ;;  %v845_v50 = vsel %vm536_vm4, %v831_v43, -inf }
  0xfe   : > { %v1334_v52 = vadd.f32 %v794_v48, %v651_v47  ;;  %837 = vmax.xlane.f32.xlu0 %v836_v49  ;;  %846 = vmax.xlane.f32.xlu1 %v845_v50  ;;  %v842_v59 = vsel %vm536_vm4, %v830_v51, -inf }
  0xff   : > { %v1312_v53 = vpop.f32.mrb[6].mxu1  ;;  %v833_v60 = vadd.f32 %v1333_v46, %v1237_v32 }
 0x100   : > { %v1326_v54 = vpop.f32.mrb[6].mxu0  ;;  %v832_v55 = vadd.f32 %v1334_v52, %v1237_v32  ;;  %v661_v57 = vpop.f32.mrb[7].mxu1 }
 0x101   : > { %v1335_v56 = vadd.f32 %v1326_v54, %v1312_v53  ;;  %v804_v58 = vpop.f32.mrb[7].mxu0  ;;  %v851_v0 = vsel %vm536_vm4, %v833_v60, -inf }
 0x102   : > { %v1336_v61 = vadd.f32 %v804_v58, %v661_v57  ;;  %843 = vmax.xlane.f32.xlu1 %v842_v59  ;;  %v848_v62 = vsel %vm536_vm4, %v832_v55, -inf }
 0x103   : > { %849 = vmax.xlane.f32.xlu0 %v848_v62  ;;  %v835_v1 = vadd.f32 %v1335_v56, %v1237_v32 }
 0x104   : > { %v834_v63 = vadd.f32 %v1336_v61, %v1237_v32 }
 0x105   : > { %v857_v3 = vsel %vm536_vm4, %v835_v1, -inf }
 0x106   : > { %852 = vmax.xlane.f32.xlu1 %v851_v0  ;;  %v854_v2 = vsel %vm536_vm4, %v834_v63, -inf }
 0x107   : > { %855 = vmax.xlane.f32.xlu0 %v854_v2 }
 0x10a   : > { %858 = vmax.xlane.f32.xlu1 %v857_v3 }
 0x187   : > { %v841_v4 = vpop.xlane.xlu0 %840 }
 0x188   : > { %v861_v5 = vsub.f32 %v829_v36, %v841_v4 }
 0x18a   : > { %v870_v6 = vmul.f32 1.442695, %v861_v5 }
 0x18b   : > { %v838_v7 = vpop.xlane.xlu0 %837  ;;  %v847_v8 = vpop.xlane.xlu1 %846 }
 0x18c   : > { %1433 = vpow2.f32 %v870_v6  ;;  %v860_v9 = vsub.f32 %v828_v41, %v838_v7  ;;  %v863_v10 = vsub.f32 %v831_v43, %v847_v8 }
 0x18e   : > { %v868_v11 = vmul.f32 1.442695, %v860_v9  ;;  %v874_v12 = vmul.f32 1.442695, %v863_v10 }
 0x18f   : > { %v844_v13 = vpop.xlane.xlu1 %843 }
 0x190   : > { %1435 = vpow2.f32 %v868_v11  ;;  %v862_v14 = vsub.f32 %v830_v51, %v844_v13  ;;  %v850_v15 = vpop.xlane.xlu0 %849 }
 0x191   : > { %1437 = vpow2.f32 %v874_v12  ;;  %v864_v16 = vsub.f32 %v832_v55, %v850_v15 }
 0x192   : > { %v872_v17 = vmul.f32 1.442695, %v862_v14 }
 0x193   : > { %v876_v18 = vmul.f32 1.442695, %v864_v16  ;;  %v853_v19 = vpop.xlane.xlu1 %852 }
 0x194   : > { %1439 = vpow2.f32 %v872_v17  ;;  %v865_v20 = vsub.f32 %v833_v60, %v853_v19  ;;  %v856_v21 = vpop.xlane.xlu0 %855 }
 0x195   : > { %v866_v22 = vsub.f32 %v834_v63, %v856_v21  ;;  %1441 = vpow2.f32 %v876_v18 }
 0x196   : > { %v1434_v23 = vpop.eup %1433  ;;  %v878_v24 = vmul.f32 1.442695, %v865_v20 }
 0x197   : > { %v880_v25 = vmul.f32 1.442695, %v866_v22  ;;  %v859_v26 = vpop.xlane.xlu1 %858  ;;  %v887_v27 = vsel %vm536_vm4, %v1434_v23, 0.0 }
 0x198   : > { %1443 = vpow2.f32 %v878_v24  ;;  %v867_v28 = vsub.f32 %v835_v1, %v859_v26  ;;  %888 = vadd.xlane.f32.xlu1 %v887_v27 }
 0x199   : > { %1445 = vpow2.f32 %v880_v25 }
 0x19a   : > { %v1436_v29 = vpop.eup %1435  ;;  %v882_v30 = vmul.f32 1.442695, %v867_v28 }
 0x19b   : > { %v1438_v31 = vpop.eup %1437  ;;  %v884_v32 = vsel %vm536_vm4, %v1436_v29, 0.0 }
 0x19c   : > { %1447 = vpow2.f32 %v882_v30  ;;  %v893_v33 = vsel %vm536_vm4, %v1438_v31, 0.0  ;;  %885 = vadd.xlane.f32.xlu0 %v884_v32 }
 0x19d   : > { %894 = vadd.xlane.f32.xlu1 %v893_v33 }
 0x19e   : > { %v1440_v34 = vpop.eup %1439 }
 0x19f   : > { %v890_v35 = vsel %vm536_vm4, %v1440_v34, 0.0  ;;  %v1442_v36 = vpop.eup %1441 }
 0x1a0   : > { %891 = vadd.xlane.f32.xlu0 %v890_v35  ;;  %v896_v39 = vsel %vm536_vm4, %v1442_v36, 0.0 }
 0x1a2   : > { %v1444_v37 = vpop.eup %1443 }
 0x1a3   : > { %v899_v38 = vsel %vm536_vm4, %v1444_v37, 0.0  ;;  %v1446_v40 = vpop.eup %1445 }
 0x1a4   : > { %900 = vadd.xlane.f32.xlu1 %v899_v38  ;;  %897 = vadd.xlane.f32.xlu0 %v896_v39  ;;  %v902_v43 = vsel %vm536_vm4, %v1446_v40, 0.0 }
 0x1a6   : > { %v1448_v41 = vpop.eup %1447 }
 0x1a7   : > { %v905_v42 = vsel %vm536_vm4, %v1448_v41, 0.0 }
 0x1a8   : > { %906 = vadd.xlane.f32.xlu1 %v905_v42  ;;  %903 = vadd.xlane.f32.xlu0 %v902_v43 }
 0x225   : > { %v889_v44 = vpop.xlane.xlu1 %888 }
 0x226   : > { %1449 = vrcp.f32 %v889_v44 }
 0x229   : > { %v886_v45 = vpop.xlane.xlu0 %885 }
 0x22a   : > { %v895_v46 = vpop.xlane.xlu1 %894  ;;  %1451 = vrcp.f32 %v886_v45 }
 0x22b   : > { %1453 = vrcp.f32 %v895_v46 }
 0x22d   : > { %v892_v47 = vpop.xlane.xlu0 %891 }
 0x22e   : > { %1455 = vrcp.f32 %v892_v47 }
 0x230   : > { %v1450_v48 = vpop.eup %1449 }
 0x231   : > { %v917_v49 = vmul.f32 %v1450_v48, %v1434_v23  ;;  %v901_v50 = vpop.xlane.xlu1 %900  ;;  %v898_v51 = vpop.xlane.xlu0 %897 }
 0x232   : > { %1457 = vrcp.f32 %v901_v50 }
 0x233   : > { %925 = vst.msk [vmem:[%s1725_s16 + $0x8] sm:$0xff] %vm536_vm4, %v917_v49  ;;  %1459 = vrcp.f32 %v898_v51 }
 0x234   : > { %v1452_v52 = vpop.eup %1451 }
 0x235   : > { %v1454_v53 = vpop.eup %1453  ;;  %v916_v54 = vmul.f32 %v1452_v52, %v1436_v29  ;;  %v907_v55 = vpop.xlane.xlu1 %906 }
 0x236   : > { %v904_v56 = vpop.xlane.xlu0 %903  ;;  %v919_v57 = vmul.f32 %v1454_v53, %v1438_v31  ;;  %1461 = vrcp.f32 %v907_v55 }
 0x237   : > { %924 = vst.msk [vmem:[%s1725_s16] sm:$0xff] %vm536_vm4, %v916_v54  ;;  %1463 = vrcp.f32 %v904_v56 }
 0x238   : > { %v1456_v58 = vpop.eup %1455  ;;  %927 = vst.msk [vmem:[%s1725_s16 + $0x18] sm:$0xff] %vm536_vm4, %v919_v57 }
 0x239   : > { %v918_v59 = vmul.f32 %v1456_v58, %v1440_v34 }
 0x23b   : > { %926 = vst.msk [vmem:[%s1725_s16 + $0x10] sm:$0xff] %vm536_vm4, %v918_v59 }
 0x23c   : > { %v1458_v60 = vpop.eup %1457 }
 0x23d   : > { %v1460_v61 = vpop.eup %1459  ;;  %v921_v62 = vmul.f32 %v1458_v60, %v1444_v37 }
 0x23e   : > { %v920_v63 = vmul.f32 %v1460_v61, %v1442_v36  ;;  %938 = sbr.rel (!%p1618_p4) target bundleno = 630 (0x276), region = 52 }
 0x23f   : > { %929 = vst.msk [vmem:[%s1725_s16 + $0x28] sm:$0xff] %vm536_vm4, %v921_v62 }
 0x240   : > { %v1462_v0 = vpop.eup %1461  ;;  %928 = vst.msk [vmem:[%s1725_s16 + $0x20] sm:$0xff] %vm536_vm4, %v920_v63 }
 0x241   : > { %v1464_v1 = vpop.eup %1463  ;;  %v923_v2 = vmul.f32 %v1462_v0, %v1448_v41 }
 0x242   : > { %v922_v3 = vmul.f32 %v1464_v1, %v1446_v40 }
 0x243   : > { %931 = vst.msk [vmem:[%s1725_s16 + $0x38] sm:$0xff] %vm536_vm4, %v923_v2 }
 0x244   : > { %930 = vst.msk [vmem:[%s1725_s16 + $0x30] sm:$0xff] %vm536_vm4, %v922_v3 }
 0x245   : > { %s1820_s24 = smov (!%p941_p8, %s940_s24), 8 }
 0x246   : > { %s1240_s21 = sshll.u32 %s1820_s24, 7 }
 0x247   : > { %p1243_p9 = scmp.eq.s32.totalorder %s1240_s21, 0 }
 0x248   : > { %s1756_s22 = sshrl.u32 (!%p1243_p9), %s1820_s24, 3 }
 0x249   : > { %949 = sbr.rel (%p1243_p9) target bundleno = 630 (0x276), region = 56  ;;  %p1244_p10 = scmp.le.s32.totalorder (!%p1243_p9), %s1756_s22, 0 }
 0x250   : > { %1143 = sbr.rel (%p1244_p10) target bundleno = 609 (0x261), region = 138  ;;  %s1813_s27 = smov (!%p1244_p10), %s1750_s20 }
 0x251   : > { %s1814_s9 = smov (!%p1244_p10), %s1725_s16  ;;  %s1765_s14 = smov (!%p1244_p10), 0  }
 0x252   : > { %s1767_s23 = smov (!%p1244_p10), 0  }
 0x257 LB: >> { %v1025_v4 = vld [vmem:[%s1527_s9] sm:$0xff]  ;;  %v1027_v5 = vld [vmem:[%s1527_s9 + $0x8] sm:$0xff]  ;;  %v1029_v6 = vld [vmem:[%s1527_s9 + $0x10] sm:$0xff]  ;;  %s1041_s26 = sadd.s32 1, %s1531_s14  ;;  %s1019_s23 = sadd.s32 1, %s1535_s23   ;;  %s1535_s23 = sphi %s1767_s23, %s1019_s23   ;;  %s1531_s14 = sphi %s1765_s14, %s1815_s14   ;;  %s1527_s9 = sphi %s1814_s9, %s1046_s9   ;;  %s1523_s27 = sphi %s1813_s27, %s1047_s27  }
 0x258   : >> { %1026 = vst [vmem:[%s1523_s27] sm:$0xff] %v1025_v4  ;;  %1028 = vst [vmem:[%s1523_s27 + $0x8] sm:$0xff] %v1027_v5  ;;  %v1031_v7 = vld [vmem:[%s1527_s9 + $0x18] sm:$0xff]  ;;  %v1033_v8 = vld [vmem:[%s1527_s9 + $0x20] sm:$0xff]  ;;  %p1042_p11 = scmp.ge.s32.totalorder %s1041_s26, %s1756_s22  ;;  %p1018_p12 = scmp.ge.s32.totalorder %s1019_s23, %s1756_s22 }
 0x259   : >> { %1030 = vst [vmem:[%s1523_s27 + $0x10] sm:$0xff] %v1029_v6  ;;  %v1035_v9 = vld [vmem:[%s1527_s9 + $0x28] sm:$0xff]  ;;  %1032 = vst [vmem:[%s1523_s27 + $0x18] sm:$0xff] %v1031_v7  ;;  %v1037_v10 = vld [vmem:[%s1527_s9 + $0x30] sm:$0xff] }
 0x25a   : >> { %1034 = vst [vmem:[%s1523_s27 + $0x20] sm:$0xff] %v1033_v8  ;;  %1036 = vst [vmem:[%s1523_s27 + $0x28] sm:$0xff] %v1035_v9  ;;  %v1039_v11 = vld [vmem:[%s1527_s9 + $0x38] sm:$0xff]  ;;  %s1822_s26 = smov (%p1042_p11, %s1041_s26), 0  ;;  %1021 = sbr.rel (!%p1018_p12) target bundleno = 599 (0x257), region = 144 }
 0x25b   : >> { %1038 = vst [vmem:[%s1523_s27 + $0x30] sm:$0xff] %v1037_v10  ;;  %1040 = vst [vmem:[%s1523_s27 + $0x38] sm:$0xff] %v1039_v11  ;;  %s1245_s29 = sshll.u32 %s1822_s26, 6  ;;  %s1815_s14 = smov %s1822_s26 }
 0x25c   : >> { %s1046_s9 = scalar_lea.vmem %s1725_s16, %s1245_s29 [#allocation2]   ;;  %s1047_s27 = scalar_lea.vmem %s1750_s20, %s1245_s29  }
 0x261 PF: > { %s1786_s30 = sand.u32 7, %s1820_s24   ;;  %s1256_s10 = sshll.u32 %s1756_s22, 6 }
 0x262   : > { %s1052_s11 = scalar_lea.vmem %s1725_s16, %s1256_s10 [#allocation2]   ;;  %s1054_s12 = scalar_lea.vmem %s1750_s20, %s1256_s10  }
 0x263   : > { %p1250_p13 = scmp.le.s32.totalorder %s1786_s30, 0 }
 0x264   : > { %s1537_s13 = smov (!%p1250_p13), %s1054_s12   ;;  %s1541_s15 = smov (!%p1250_p13), %s1052_s11  }
 0x265   : > { %1157 = sbr.rel (%p1250_p13) target bundleno = 630 (0x276), region = 149  ;;  %s1545_s17 = smov (!%p1250_p13), 0  }
 0x266   : > { %s1549_s18 = smov (!%p1250_p13), 0  }
 0x26c LB: >> { %v1064_v12 = vld [vmem:[%s1543_s15] sm:$0xff]  ;;  %s1066_s24 = sadd.s32 1, %s1547_s17  ;;  %s1058_s18 = sadd.s32 1, %s1551_s18   ;;  %s1551_s18 = sphi %s1549_s18, %s1058_s18   ;;  %s1547_s17 = sphi %s1545_s17, %s1546_s17   ;;  %s1543_s15 = sphi %s1541_s15, %s1071_s15   ;;  %s1539_s13 = sphi %s1537_s13, %s1072_s13  }
 0x26d   : >> { %1065 = vst [vmem:[%s1539_s13] sm:$0xff] %v1064_v12  ;;  %p1067_p0 = scmp.ge.s32.totalorder %s1066_s24, %s1786_s30  ;;  %p1057_p1 = scmp.ge.s32.totalorder %s1058_s18, %s1786_s30 }
 0x26f   : >> { %s1824_s24 = smov (%p1067_p0, %s1066_s24), 0  ;;  %1060 = sbr.rel (!%p1057_p1) target bundleno = 620 (0x26c), region = 155 }
 0x270   : >> { %s1251_s16 = sshll.u32 %s1824_s24, 3  ;;  %s1546_s17 = smov %s1824_s24  }
 0x271   : >> { %s1071_s15 = scalar_lea.vmem %s1052_s11, %s1251_s16 [#allocation2]   ;;  %s1072_s13 = scalar_lea.vmem %s1054_s12, %s1251_s16  }
 0x276 PF: > { %p14_p2 = scmp.ge.s32.totalorder %s1608_s28, 6   ;;  %s1816_s24 = smov %s1515_s25 }
 0x277   : > { %s1817_s25 = smov %s1616_s8  ;;  %s1818_s26 = smov %s1608_s28 }
 0x278   :  { %16 = sbr.rel (!%p14_p2) target bundleno = 2 (0x2), region = 166 }

</bundles_post_ra>
